<compile_context>
chip_gen: v5e
topology: v5e:2x2
jax: 0.10.0
libtpu: 0.0.40
codegen_flags: <defaults>
</compile_context>

<pallas_src>
import jax
import jax.numpy as jnp
from jax.experimental import pallas as pl
from jax.experimental.pallas import tpu as pltpu

HIDDEN_DIM_1 = 53
INPUT_DIM_1 = 25
NUM_LAYERS_1 = 5          # PyTorch constant: the model has NUM_LAYERS_1 - 1 = 4 Linear layers
OUTPUT_DIM_1 = 1296

_LAYER_DIMS = [(INPUT_DIM_1, HIDDEN_DIM_1),
               (HIDDEN_DIM_1, HIDDEN_DIM_1),
               (HIDDEN_DIM_1, HIDDEN_DIM_1),
               (HIDDEN_DIM_1, OUTPUT_DIM_1)]

_SINGLE_SHOT_MAX_ROWS = 256   # above this, go gridded so v7x can use both TCs
_MAX_BLOCK_ROWS = 2048        # v7x VMEM ceiling re-derivation (64 MiB physical / TC)


def _cdiv(a, b):
    return -(-a // b)


def _round_up(a, m):
    return _cdiv(a, m) * m


def mlp_kernel(x_ref,
               w0_ref, b0_ref,
               w1_ref, b1_ref,
               w2_ref, b2_ref,
               w3_ref, b3_ref,
               o_ref):
    h = x_ref[...]
    # hidden layer 0: 25 -> 53, sigmoid
    h = jax.nn.sigmoid(
        jnp.dot(h, w0_ref[...], preferred_element_type=jnp.float32) + b0_ref[...])
    # hidden layer 1: 53 -> 53, sigmoid
    h = jax.nn.sigmoid(
        jnp.dot(h, w1_ref[...], preferred_element_type=jnp.float32) + b1_ref[...])
    # hidden layer 2: 53 -> 53, sigmoid
    h = jax.nn.sigmoid(
        jnp.dot(h, w2_ref[...], preferred_element_type=jnp.float32) + b2_ref[...])
    # output layer: 53 -> 1296, no activation
    o_ref[...] = (
        jnp.dot(h, w3_ref[...], preferred_element_type=jnp.float32) + b3_ref[...]
    ).astype(o_ref.dtype)


def _flatten_params(params):
    flat = []
    for (w, b) in params:
        flat.extend([w, b])
    return flat


def _weight_specs(params, n_grid_args):
    """Constant index_maps -> weights stay VMEM-resident across grid steps."""
    specs = []
    if n_grid_args == 0:
        idx_map = lambda: (0, 0)
    else:
        idx_map = lambda i: (0, 0)
    for (w, b) in params:
        specs.append(pl.BlockSpec(w.shape, idx_map))
        specs.append(pl.BlockSpec(b.shape, idx_map))
    return specs


def _choose_tile(batch, max_rows):
    """Row tile: multiple of 8, <= max_rows, giving an even, balanced grid
    (so the 'parallel' batch axis splits evenly over v7x's 2 TensorCores)."""
    max_rows = max(8, (max_rows // 8) * 8)
    pairs = _cdiv(batch, 2 * max_rows)
    return _round_up(_cdiv(batch, 2 * pairs), 8)


def _vmem_bytes_estimate(tile_rows):
    """Rough padded-VMEM footprint of the batched pipeline (f32 everywhere)."""
    x_bytes = 2 * tile_rows * _round_up(INPUT_DIM_1, 128) * 4      # double-buffered
    o_bytes = 2 * tile_rows * _round_up(OUTPUT_DIM_1, 128) * 4     # double-buffered
    w_bytes = 0
    for (fi, fo) in _LAYER_DIMS:
        w_bytes += _round_up(fi, 8) * _round_up(fo, 128) * 4       # W
        w_bytes += 8 * _round_up(fo, 128) * 4                      # b
    return x_bytes + o_bytes + 2 * w_bytes


def net_forward(x, params, *, block_rows=512):
    """params: list of (W(in,out), b(1,out)) tuples, length 4."""
    B = x.shape[0]
    flat = _flatten_params(params)

    if B <= _SINGLE_SHOT_MAX_ROWS:
        # Single-shot kernel: no grid, no pipeline overhead. Right choice for
        # small batches where launch + the one-time weight DMA dominate.
        in_specs = [pl.BlockSpec(x.shape, lambda: (0, 0))]
        in_specs += _weight_specs(params, n_grid_args=0)
        return pl.pallas_call(
            mlp_kernel,
            out_shape=jax.ShapeDtypeStruct((B, OUTPUT_DIM_1), jnp.float32),
            grid=(),
            in_specs=in_specs,
            out_specs=pl.BlockSpec((B, OUTPUT_DIM_1), lambda: (0, 0)),
        )(x, *flat)

    # Batched path: tile the batch axis, weights resident across all steps.
    # No padding / post-slice: out_shape is exactly (B, 1296) and Pallas masks
    # the ragged last block (rows are independent, so garbage in the last
    # partial input block never reaches a valid output row).
    tile = _choose_tile(B, min(block_rows, _MAX_BLOCK_ROWS))
    n_blocks = _cdiv(B, tile)

    in_specs = [pl.BlockSpec((tile, INPUT_DIM_1), lambda i: (i, 0))]
    in_specs += _weight_specs(params, n_grid_args=1)

    compiler_kwargs = dict(dimension_semantics=("parallel",))
    est = _vmem_bytes_estimate(tile)
    if est > 12 * 1024 * 1024:
        # Only needed for very large row tiles (>= ~1024): v5e's scoped-VMEM
        # default is 16 MiB.  Leave the default alone otherwise.
        compiler_kwargs["vmem_limit_bytes"] = int(est * 1.25)

    return pl.pallas_call(
        mlp_kernel,
        out_shape=jax.ShapeDtypeStruct((B, OUTPUT_DIM_1), jnp.float32),
        grid=(n_blocks,),
        in_specs=in_specs,
        out_specs=pl.BlockSpec((tile, OUTPUT_DIM_1), lambda i: (i, 0)),
        compiler_params=pltpu.CompilerParams(**compiler_kwargs),
    )(x, *flat)


def init_params(key):
    """Deterministic init matching nn.Linear default: U(-1/sqrt(fan_in), +)."""
    params = []
    for (fan_in, fan_out) in _LAYER_DIMS:
        key, kw, kb = jax.random.split(key, 3)
        bound = 1.0 / jnp.sqrt(float(fan_in))
        w = jax.random.uniform(kw, (fan_in, fan_out), jnp.float32, -bound, bound)
        b = jax.random.uniform(kb, (1, fan_out), jnp.float32, -bound, bound)
        params.append((w, b))
    return params


def net_forward_ref(x, params):
    h = x
    for (w, b) in params[:-1]:
        h = jax.nn.sigmoid(h @ w + b)
    w, b = params[-1]
    return h @ w + b


if __name__ == "__main__":
    key = jax.random.PRNGKey(0)
    key, kx_small, kx_big = jax.random.split(key, 3)
    params = init_params(key)

    # 1) small batch -> single-shot grid=() path
    B_small = 8
    x_small = jax.random.normal(kx_small, (B_small, INPUT_DIM_1), jnp.float32)
    out_small = jax.block_until_ready(net_forward(x_small, params))
    ref_small = net_forward_ref(x_small, params)
    assert out_small.shape == (B_small, OUTPUT_DIM_1)
    assert jnp.allclose(out_small, ref_small, atol=1e-5, rtol=1e-5)

    # 2) larger batch -> gridded path: tile = 304 rows, 2 blocks (balanced for
    #    v7x's two TCs), ragged last block (296 valid rows) masked by Pallas,
    #    no pad / post-slice copy. Verifies the ragged-block masking path.
    B_big = 600
    x_big = jax.random.normal(kx_big, (B_big, INPUT_DIM_1), jnp.float32)
    out_big = jax.block_until_ready(net_forward(x_big, params))
    ref_big = net_forward_ref(x_big, params)
    assert out_big.shape == (B_big, OUTPUT_DIM_1)
    assert jnp.allclose(out_big, ref_big, atol=1e-5, rtol=1e-5)

    print("KERNEL_OK")
</pallas_src>

<mosaic_0001>
module attributes {stable_mosaic.version = 11 : i64} {
  func.func @mlp_kernel(%arg0: memref<8x25xf32, #tpu.memory_space<vmem>>, %arg1: memref<25x53xf32, #tpu.memory_space<vmem>>, %arg2: memref<1x53xf32, #tpu.memory_space<vmem>>, %arg3: memref<53x53xf32, #tpu.memory_space<vmem>>, %arg4: memref<1x53xf32, #tpu.memory_space<vmem>>, %arg5: memref<53x53xf32, #tpu.memory_space<vmem>>, %arg6: memref<1x53xf32, #tpu.memory_space<vmem>>, %arg7: memref<53x1296xf32, #tpu.memory_space<vmem>>, %arg8: memref<1x1296xf32, #tpu.memory_space<vmem>>, %arg9: memref<8x1296xf32, #tpu.memory_space<vmem>>) attributes {dimension_semantics = [], scalar_prefetch = 0 : i64, scratch_operands = 0 : i64, tpu.core_type = #tpu.core_type<tc>} {
    %c0 = arith.constant 0 : index
    %c0_0 = arith.constant 0 : index
    %0 = vector.load %arg0[%c0, %c0_0] : memref<8x25xf32, #tpu.memory_space<vmem>>, vector<8x25xf32>
    %c0_1 = arith.constant 0 : index
    %c0_2 = arith.constant 0 : index
    %1 = vector.load %arg1[%c0_1, %c0_2] : memref<25x53xf32, #tpu.memory_space<vmem>>, vector<25x53xf32>
    %cst = arith.constant dense<0.000000e+00> : vector<8x53xf32>
    %2 = tpu.matmul %0, %1, %cst {dimension_numbers = #tpu.dot_dimension_numbers<[1], [0], [0], [1], [0, 0, 1, 1], [], []>} : vector<8x25xf32>, vector<25x53xf32>, vector<8x53xf32> -> vector<8x53xf32>
    %c0_3 = arith.constant 0 : index
    %c0_4 = arith.constant 0 : index
    %3 = vector.load %arg2[%c0_3, %c0_4] : memref<1x53xf32, #tpu.memory_space<vmem>>, vector<1x53xf32>
    %4 = vector.broadcast %3 : vector<1x53xf32> to vector<8x53xf32>
    %5 = arith.addf %2, %4 : vector<8x53xf32>
    %6 = arith.negf %5 : vector<8x53xf32>
    %7 = math.exp %6 : vector<8x53xf32>
    %cst_5 = arith.constant 1.000000e+00 : f32
    %8 = vector.broadcast %cst_5 : f32 to vector<8x53xf32>
    %9 = arith.addf %8, %7 : vector<8x53xf32>
    %10 = arith.divf %8, %9 : vector<8x53xf32>
    %c0_6 = arith.constant 0 : index
    %c0_7 = arith.constant 0 : index
    %11 = vector.load %arg3[%c0_6, %c0_7] : memref<53x53xf32, #tpu.memory_space<vmem>>, vector<53x53xf32>
    %cst_8 = arith.constant dense<0.000000e+00> : vector<8x53xf32>
    %12 = tpu.matmul %10, %11, %cst_8 {dimension_numbers = #tpu.dot_dimension_numbers<[1], [0], [0], [1], [0, 0, 1, 1], [], []>} : vector<8x53xf32>, vector<53x53xf32>, vector<8x53xf32> -> vector<8x53xf32>
    %c0_9 = arith.constant 0 : index
    %c0_10 = arith.constant 0 : index
    %13 = vector.load %arg4[%c0_9, %c0_10] : memref<1x53xf32, #tpu.memory_space<vmem>>, vector<1x53xf32>
    %14 = vector.broadcast %13 : vector<1x53xf32> to vector<8x53xf32>
    %15 = arith.addf %12, %14 : vector<8x53xf32>
    %16 = arith.negf %15 : vector<8x53xf32>
    %17 = math.exp %16 : vector<8x53xf32>
    %cst_11 = arith.constant 1.000000e+00 : f32
    %18 = vector.broadcast %cst_11 : f32 to vector<8x53xf32>
    %19 = arith.addf %18, %17 : vector<8x53xf32>
    %20 = arith.divf %18, %19 : vector<8x53xf32>
    %c0_12 = arith.constant 0 : index
    %c0_13 = arith.constant 0 : index
    %21 = vector.load %arg5[%c0_12, %c0_13] : memref<53x53xf32, #tpu.memory_space<vmem>>, vector<53x53xf32>
    %cst_14 = arith.constant dense<0.000000e+00> : vector<8x53xf32>
    %22 = tpu.matmul %20, %21, %cst_14 {dimension_numbers = #tpu.dot_dimension_numbers<[1], [0], [0], [1], [0, 0, 1, 1], [], []>} : vector<8x53xf32>, vector<53x53xf32>, vector<8x53xf32> -> vector<8x53xf32>
    %c0_15 = arith.constant 0 : index
    %c0_16 = arith.constant 0 : index
    %23 = vector.load %arg6[%c0_15, %c0_16] : memref<1x53xf32, #tpu.memory_space<vmem>>, vector<1x53xf32>
    %24 = vector.broadcast %23 : vector<1x53xf32> to vector<8x53xf32>
    %25 = arith.addf %22, %24 : vector<8x53xf32>
    %26 = arith.negf %25 : vector<8x53xf32>
    %27 = math.exp %26 : vector<8x53xf32>
    %cst_17 = arith.constant 1.000000e+00 : f32
    %28 = vector.broadcast %cst_17 : f32 to vector<8x53xf32>
    %29 = arith.addf %28, %27 : vector<8x53xf32>
    %30 = arith.divf %28, %29 : vector<8x53xf32>
    %c0_18 = arith.constant 0 : index
    %c0_19 = arith.constant 0 : index
    %31 = vector.load %arg7[%c0_18, %c0_19] : memref<53x1296xf32, #tpu.memory_space<vmem>>, vector<53x1296xf32>
    %cst_20 = arith.constant dense<0.000000e+00> : vector<8x1296xf32>
    %32 = tpu.matmul %30, %31, %cst_20 {dimension_numbers = #tpu.dot_dimension_numbers<[1], [0], [0], [1], [0, 0, 1, 1], [], []>} : vector<8x53xf32>, vector<53x1296xf32>, vector<8x1296xf32> -> vector<8x1296xf32>
    %c0_21 = arith.constant 0 : index
    %c0_22 = arith.constant 0 : index
    %33 = vector.load %arg8[%c0_21, %c0_22] : memref<1x1296xf32, #tpu.memory_space<vmem>>, vector<1x1296xf32>
    %34 = vector.broadcast %33 : vector<1x1296xf32> to vector<8x1296xf32>
    %35 = arith.addf %32, %34 : vector<8x1296xf32>
    %c0_23 = arith.constant 0 : index
    %c0_24 = arith.constant 0 : index
    %36 = vector.load %arg9[%c0_23, %c0_24] : memref<8x1296xf32, #tpu.memory_space<vmem>>, vector<8x1296xf32>
    tpu.vector_store %arg9[%c0_23, %c0_24], %35 {strides = array<i32>} : memref<8x1296xf32, #tpu.memory_space<vmem>>, vector<8x1296xf32>,
    return
  }
}

</mosaic_0001>

<bundles_post_ra>
// kernel: tpu_custom_call.1
= control target key start
LH: loop header
LB: loop body
LE: loop exit
PB: predicated region body
PF: predicated region fallthrough
CT: control target
= control target key end

     0   :  { %14 = vsyncpa [#allocation3], 0  ;;  %s1036_s0 = inlined_call_operand.hbm [shape: f32[8,25], index: 0, kind: input, shape index: {}]   ;;  %s1037_s1 = inlined_call_operand.hbm [shape: f32[25,53], index: 1, kind: input, shape index: {}]   ;;  %s1038_s2 = inlined_call_operand.vmem [shape: f32[1,53], index: 2, kind: input, shape index: {}]   ;;  %s1039_s3 = inlined_call_operand.hbm [shape: f32[53,53], index: 3, kind: input, shape index: {}]   ;;  %s1040_s4 = inlined_call_operand.vmem [shape: f32[1,53], index: 4, kind: input, shape index: {}]   ;;  %s1041_s5 = inlined_call_operand.hbm [shape: f32[53,53], index: 5, kind: input, shape index: {}]   ;;  %s1042_s6 = inlined_call_operand.vmem [shape: f32[1,53], index: 6, kind: input, shape index: {}]   ;;  %s1043_s7 = inlined_call_operand.hbm [shape: f32[53,1296], index: 7, kind: input, shape index: {}]   ;;  %s1044_s8 = inlined_call_operand.hbm [shape: f32[1,1296], index: 8, kind: input, shape index: {}]   ;;  %s1045_s9 = inlined_call_operand.hbm [shape: f32[8,1296], index: 9, kind: output, shape index: {}]  }
   0x1   :  { %15 = vsyncpa [#allocation6], 0 }
   0x2   :  { %16 = vsyncpa [#allocation9], 0 }
   0x3   :  { %17 = vsyncpa [#allocation12], 0  ;;  %s34_s11 = sshll.u32 %s1037_s1, 4  ;;  %s35_s11 = int_to_ptr.hbm [resolvable:$true] %s34_s11 }
   0x4   :  { %18 = vsyncpa [#allocation4], 0  ;;  %s919_s12 = smov [#allocation5]   ;;  %s64_s16 = sshll.u32 %s1041_s5, 4  ;;  %s65_s16 = int_to_ptr.hbm [resolvable:$true] %s64_s16 }
   0x5   :  { %s36_s13 = sshll.u32 %s919_s12, 4  ;;  %s920_s17 = smov 128   ;;  %s37_s13 = int_to_ptr.vmem [resolvable:$true] %s36_s13 }
   0x6   :  { %s921_s18 = smov 8   ;;  %s922_s19 = smov [#allocation8]  }
   0x7   :  { %42 = dma.hbm_to_vmem [thread:$0]  %s35_s11, 512, %s37_s13, [#allocation6], %s920_s17, %s920_s17, %s921_s18  }
   0x8   :  { %s66_s20 = sshll.u32 %s922_s19, 4  ;;  %s24_s23 = sshll.u32 %s1036_s0, 4  ;;  %s67_s20 = int_to_ptr.vmem [resolvable:$true] %s66_s20  ;;  %s25_s23 = int_to_ptr.hbm [resolvable:$true] %s24_s23 }
   0x9   :  { %72 = dma.hbm_to_vmem [thread:$0]  %s65_s16, 896, %s67_s20, [#allocation9], %s920_s17, %s920_s17, %s921_s18  }
   0xa   :  { %s49_s25 = sshll.u32 %s1039_s3, 4  ;;  %s923_s26 = smov [#allocation2]   ;;  %s50_s25 = int_to_ptr.hbm [resolvable:$true] %s49_s25 }
   0xb   :  { %s26_s27 = sshll.u32 %s923_s26, 4  ;;  %s924_s5 = smov [#allocation7]   ;;  %s27_s27 = int_to_ptr.vmem [resolvable:$true] %s26_s27 }
   0xc   :  { %29 = dma.hbm_to_vmem [thread:$0]  %s25_s23, 128, %s27_s27, [#allocation3]  }
   0xd   :  { %s51_s28 = sshll.u32 %s924_s5, 4  ;;  %s79_s10 = sshll.u32 %s1043_s7, 4  ;;  %s52_s28 = int_to_ptr.vmem [resolvable:$true] %s51_s28  ;;  %s80_s10 = int_to_ptr.hbm [resolvable:$true] %s79_s10 }
   0xe   :  { %57 = dma.hbm_to_vmem [thread:$0]  %s50_s25, 896, %s52_s28, [#allocation6], %s920_s17, %s920_s17, %s921_s18  }
   0xf   :  { %s925_s0 = smov [#allocation10]   ;;  %s93_s3 = sshll.u32 %s1044_s8, 4  ;;  %s94_s3 = int_to_ptr.hbm [resolvable:$true] %s93_s3 }
  0x10   :  { %s81_s11 = sshll.u32 %s925_s0, 4  ;;  %s926_s14 = smov 1408   ;;  %s82_s11 = int_to_ptr.vmem [resolvable:$true] %s81_s11 }
  0x11   :  { %s927_s15 = smov 88   ;;  %s928_s16 = smov [#allocation11]  }
  0x12   :  { %87 = dma.hbm_to_vmem [thread:$0]  %s80_s10, 9856, %s82_s11, [#allocation9], %s926_s14, %s926_s14, %s927_s15  }
  0x13   :  { %s95_s19 = sshll.u32 %s928_s16, 4  ;;  %s96_s19 = int_to_ptr.vmem [resolvable:$true] %s95_s19 }
  0x14   :  { %98 = dma.hbm_to_vmem [thread:$0]  %s94_s3, 176, %s96_s19, [#allocation12]  }
  0x15   :  { %909 = dma.done.wait [#allocation3], 128  }
  0x16   :  { %910 = vsyncadd [#allocation3], 4294967168 }
  0x17   :  { %911 = dma.done.wait [#allocation6], 1408  }
  0x18   :  { %912 = vsyncadd [#allocation6], 4294965888 }
  0x19   :  { %913 = dma.done.wait [#allocation9], 10752  }
  0x1a   :  { %914 = vsyncadd [#allocation9], 4294956544 }
  0x1b   :  { %915 = dma.done.wait [#allocation12], 176  }
  0x1c   :  { %916 = vsyncadd [#allocation12], 4294967120  ;;  %vm136_vm0 = vcmask 1040384   ;;  %v127_v0 = vld [vmem:[#allocation5 + $0x18] sm:$0x1]  ;;  %v126_v1 = vld [vmem:[#allocation5 + $0x10] sm:$0xff] }
  0x1d   :  { %684 = vmatpush.msk.msra.mxu0 %vm136_vm0, %v127_v0  ;;  %v125_v2 = vld [vmem:[#allocation5 + $0x8] sm:$0xff]  ;;  %v124_v3 = vld [vmem:[#allocation5] sm:$0xff]  ;;  %v123_v4 = vld [vmem:[#allocation2] sm:$0xff]  ;;  %vm132_vm1 = vcmask 203776   ;;  %vm194_vm2 = vcmask 1044480   ;;  %vm190_vm6 = vcmask 433152  }
  0x1e   :  { %v185_v5 = vld [vmem:[#allocation7 + $0x30] sm:$0x1f]  ;;  %v184_v6 = vld [vmem:[#allocation7 + $0x28] sm:$0xff]  ;;  %v183_v7 = vld [vmem:[#allocation7 + $0x20] sm:$0xff]  ;;  %vm662_vm0 = vcmask 130048   ;;  %s671_s23 = sshll.u32 %s1045_s9, 4  ;;  %s672_s23 = int_to_ptr.hbm [resolvable:$true] %s671_s23 }
  0x1f   :  { %153 = vmatpush.msra.mxu0 %v126_v1  ;;  %687 = vmatpush.msk.msra.mxu1 %vm194_vm2, %v185_v5  ;;  %v182_v8 = vld [vmem:[#allocation7 + $0x18] sm:$0xff]  ;;  %v181_v9 = vld [vmem:[#allocation7 + $0x10] sm:$0xff]  ;;  %v180_v10 = vld [vmem:[#allocation7 + $0x8] sm:$0xff] }
  0x20   :  { %v179_v11 = vld [vmem:[#allocation7] sm:$0xff]  ;;  %v726_v12 = vld [vmem:[%s1038_s2] ss:$0 sm:$0xff]  ;;  %v243_v28 = vld [vmem:[#allocation8 + $0x30] sm:$0x1f] }
  0x21   :  { %154 = vmatpush.msra.mxu0 %v125_v2  ;;  %208 = vmatpush.msra.mxu1 %v184_v6  ;;  %v242_v29 = vld [vmem:[#allocation8 + $0x28] sm:$0xff]  ;;  %v241_v30 = vld [vmem:[#allocation8 + $0x20] sm:$0xff]  ;;  %v240_v31 = vld [vmem:[#allocation8 + $0x18] sm:$0xff] }
  0x22   :  { %690 = vmatpush.msk.msra.mxu2 %vm194_vm2, %v243_v28  ;;  %v239_v32 = vld [vmem:[#allocation8 + $0x10] sm:$0xff]  ;;  %v238_v33 = vld [vmem:[#allocation8 + $0x8] sm:$0xff]  ;;  %v237_v34 = vld [vmem:[#allocation8] sm:$0xff] }
  0x23   :  { %155 = vmatpush.msra.mxu0 %v124_v3  ;;  %209 = vmatpush.msra.mxu1 %v183_v7  ;;  %v727_v35 = vld [vmem:[%s1040_s4] ss:$0 sm:$0xff]  ;;  %v359_v51 = vld [vmem:[#allocation10 + $0x210] sm:$0x1f]  ;;  %v360_v52 = vld [vmem:[#allocation10 + $0x218] sm:$0x1f] }
  0x24   :  { %685 = vmatmul.msk.f32.vlgmr.msra.gmra.mxu0 %vm132_vm1, %v123_v4  ;;  %264 = vmatpush.msra.mxu2 %v242_v29  ;;  %v361_v53 = vld [vmem:[#allocation10 + $0x220] sm:$0x1f]  ;;  %v348_v54 = vld [vmem:[#allocation10 + $0x1b8] sm:$0xff]  ;;  %v350_v56 = vld [vmem:[#allocation10 + $0x1c8] sm:$0xff] }
  0x25   :  { %210 = vmatpush.msra.mxu1 %v182_v8  ;;  %693 = vmatpush.msk.msra.mxu3 %vm194_vm2, %v359_v51  ;;  %v349_v55 = vld [vmem:[#allocation10 + $0x1c0] sm:$0xff]  ;;  %v338_v58 = vld [vmem:[#allocation10 + $0x168] sm:$0xff]  ;;  %v339_v59 = vld [vmem:[#allocation10 + $0x170] sm:$0xff] }
  0x26   :  { %265 = vmatpush.msra.mxu2 %v241_v30  ;;  %695 = vmatpush.msk.msrb.mxu0 %vm194_vm2, %v360_v52  ;;  %v337_v57 = vld [vmem:[#allocation10 + $0x160] sm:$0xff]  ;;  %v362_v60 = vld [vmem:[#allocation10 + $0x228] sm:$0x1f]  ;;  %v327_v62 = vld [vmem:[#allocation10 + $0x110] sm:$0xff] }
  0x27   :  { %211 = vmatpush.msra.mxu1 %v181_v9  ;;  %442 = vmatpush.msra.mxu3 %v348_v54  ;;  %v326_v61 = vld [vmem:[#allocation10 + $0x108] sm:$0xff]  ;;  %v328_v63 = vld [vmem:[#allocation10 + $0x118] sm:$0xff]  ;;  %v351_v0 = vld [vmem:[#allocation10 + $0x1d0] sm:$0xff] }
  0x28   :  { %266 = vmatpush.msra.mxu2 %v240_v31  ;;  %462 = vmatpush.msrb.mxu0 %v349_v55  ;;  %v315_v1 = vld [vmem:[#allocation10 + $0xb0] sm:$0xff]  ;;  %v316_v2 = vld [vmem:[#allocation10 + $0xb8] sm:$0xff]  ;;  %v317_v3 = vld [vmem:[#allocation10 + $0xc0] sm:$0xff] }
  0x29   :  { %212 = vmatpush.msra.mxu1 %v180_v10  ;;  %443 = vmatpush.msra.mxu3 %v337_v57  ;;  %v340_v4 = vld [vmem:[#allocation10 + $0x178] sm:$0xff]  ;;  %v305_v6 = vld [vmem:[#allocation10 + $0x60] sm:$0xff]  ;;  %v306_v7 = vld [vmem:[#allocation10 + $0x68] sm:$0xff] }
  0x2a   :  { %267 = vmatpush.msra.mxu2 %v239_v32  ;;  %463 = vmatpush.msrb.mxu0 %v338_v58  ;;  %v304_v5 = vld [vmem:[#allocation10 + $0x58] sm:$0xff]  ;;  %v329_v8 = vld [vmem:[#allocation10 + $0x120] sm:$0xff]  ;;  %v294_v10 = vld [vmem:[#allocation10 + $0x8] sm:$0xff] }
  0x2b   :  { %213 = vmatpush.msra.mxu1 %v179_v11  ;;  %444 = vmatpush.msra.mxu3 %v326_v61  ;;  %v293_v9 = vld [vmem:[#allocation10] sm:$0xff]  ;;  %v295_v11 = vld [vmem:[#allocation10 + $0x10] sm:$0xff]  ;;  %v320_v30 = vld [vmem:[#allocation10 + $0xd8] sm:$0xff] }
  0x2c   :  { %268 = vmatpush.msra.mxu2 %v238_v33  ;;  %464 = vmatpush.msrb.mxu0 %v327_v62  ;;  %v355_v28 = vld [vmem:[#allocation10 + $0x1f0] sm:$0xff]  ;;  %v321_v31 = vld [vmem:[#allocation10 + $0xe0] sm:$0xff]  ;;  %v728_v32 = vld [vmem:[%s1042_s6] ss:$0 sm:$0xff]  ;;  %s929_s6 = smov [#allocation13]  }
  0x2d   :  { %697 = vmatpush.msk.msrb.mxu1 %vm194_vm2, %v361_v53  ;;  %445 = vmatpush.msra.mxu3 %v315_v1  ;;  %v319_v29 = vld [vmem:[#allocation10 + $0xd0] sm:$0xff]  ;;  %v344_v33 = vld [vmem:[#allocation10 + $0x198] sm:$0xff]  ;;  %v369_v61 = vld [vmem:[#allocation10 + $0x260] sm:$0x1f]  ;;  %s669_s20 = sshll.u32 %s929_s6, 4  ;;  %s670_s20 = int_to_ptr.vmem [resolvable:$true] %s669_s20 }
  0x2e   :  { %269 = vmatpush.msra.mxu2 %v237_v34  ;;  %465 = vmatpush.msrb.mxu0 %v316_v2  ;;  %v308_v34 = vld [vmem:[#allocation10 + $0x78] sm:$0xff]  ;;  %v345_v1 = vld [vmem:[#allocation10 + $0x1a0] sm:$0xff]  ;;  %v346_v2 = vld [vmem:[#allocation10 + $0x1a8] sm:$0xff] }
  0x2f   :  { %482 = vmatpush.msrb.mxu1 %v350_v56  ;;  %446 = vmatpush.msra.mxu3 %v304_v5  ;;  %v356_v62 = vld [vmem:[#allocation10 + $0x1f8] sm:$0xff]  ;;  %v335_v5 = vld [vmem:[#allocation10 + $0x150] sm:$0xff] }
  0x30   :  { %699 = vmatpush.msk.msrb.mxu2 %vm194_vm2, %v362_v60  ;;  %466 = vmatpush.msrb.mxu0 %v305_v6  ;;  %v368_v60 = vld [vmem:[#allocation10 + $0x258] sm:$0x1f] }
  0x31   :  { %483 = vmatpush.msrb.mxu1 %v339_v59  ;;  %447 = vmatpush.msra.mxu3 %v293_v9  ;;  %v367_v59 = vld [vmem:[#allocation10 + $0x250] sm:$0x1f]  ;;  %v336_v6 = vld [vmem:[#allocation10 + $0x158] sm:$0xff]  ;;  %v325_v9 = vld [vmem:[#allocation10 + $0x100] sm:$0xff] }
  0x32   :  { %502 = vmatpush.msrb.mxu2 %v351_v0  ;;  %467 = vmatpush.msrb.mxu0 %v294_v10  ;;  %v358_v0 = vld [vmem:[#allocation10 + $0x208] sm:$0xff]  ;;  %v312_v10 = vld [vmem:[#allocation10 + $0x98] sm:$0xff] }
  0x33   :  { %484 = vmatpush.msrb.mxu1 %v328_v63  ;;  %v357_v63 = vld [vmem:[#allocation10 + $0x200] sm:$0xff] }
  0x34   :  { %503 = vmatpush.msrb.mxu2 %v340_v4  ;;  %v334_v4 = vld [vmem:[#allocation10 + $0x148] sm:$0xff] }
  0x35   :  { %485 = vmatpush.msrb.mxu1 %v317_v3  ;;  %v347_v3 = vld [vmem:[#allocation10 + $0x1b0] sm:$0xff] }
  0x36   :  { %504 = vmatpush.msrb.mxu2 %v329_v8  ;;  %v324_v8 = vld [vmem:[#allocation10 + $0xf8] sm:$0xff] }
  0x37   :  { %486 = vmatpush.msrb.mxu1 %v306_v7  ;;  %v323_v7 = vld [vmem:[#allocation10 + $0xf0] sm:$0xff] }
  0x39   :  { %487 = vmatpush.msrb.mxu1 %v295_v11  ;;  %v313_v11 = vld [vmem:[#allocation10 + $0xa0] sm:$0xff] }
  0xa1   :  { %v157_v13 = vpop.f32.mrf.mxu0 }
  0xa2   :  { %v158_v14 = vadd.f32 %v726_v12, %v157_v13  ;;  %v318_v12 = vld [vmem:[#allocation10 + $0xc8] sm:$0xff]  ;;  %v363_v13 = vld [vmem:[#allocation10 + $0x230] sm:$0x1f] }
  0xa3   :  { %505 = vmatpush.msrb.mxu2 %v318_v12  ;;  %701 = vmatpush.msk.msrb.mxu3 %vm194_vm2, %v363_v13  ;;  %v314_v12 = vld [vmem:[#allocation10 + $0xa8] sm:$0xff]  ;;  %v301_v13 = vld [vmem:[#allocation10 + $0x40] sm:$0xff] }
  0xa4   :  { %v686_v15 = vmul.f32 -1.442695, %v158_v14  ;;  %v364_v14 = vld [vmem:[#allocation10 + $0x238] sm:$0x1f] }
  0xa5   :  { %703 = vmatpush.msk.msra.mxu0 %vm194_vm2, %v364_v14  ;;  %v302_v14 = vld [vmem:[#allocation10 + $0x48] sm:$0xff] }
  0xa6   :  { %729 = vpow2.f32 %v686_v15  ;;  %v365_v15 = vld [vmem:[#allocation10 + $0x240] sm:$0x1f] }
  0xac   :  { %v730_v16 = vpop.eup %729 }
  0xad   :  { %v163_v17 = vadd.f32 1.0, %v730_v16  ;;  %v307_v16 = vld [vmem:[#allocation10 + $0x70] sm:$0xff] }
  0xae   :  { %506 = vmatpush.msrb.mxu2 %v307_v16  ;;  %v370_v16 = vld [vmem:[#allocation11] sm:$0xff] }
  0xaf   :  { %731 = vrcp.f32 %v163_v17  ;;  %v175_v21 = vand.u32 2147483648, %v163_v17  ;;  %v173_v23 = vand.u32 2147483647, %v163_v17  ;;  %vm169_vm4 = vweird.f32 %v163_v17 }
  0xb1   :  { %v176_v25 = vor.u32 1.1754944e-38, %v175_v21  ;;  %vm174_vm7 = vcmp.eq.f32.partialorder %v173_v23, 8.507059e+37  ;;  %v341_v21 = vld [vmem:[#allocation10 + $0x180] sm:$0xff]  ;;  %v343_v23 = vld [vmem:[#allocation10 + $0x190] sm:$0xff] }
  0xb5   :  { %v732_v18 = vpop.eup %731 }
  0xb6   :  { %v165_v19 = vmul.f32 %v732_v18, %v163_v17  ;;  %vm170_vm3 = vweird.f32 %v732_v18  ;;  %v352_v17 = vld [vmem:[#allocation10 + $0x1d8] sm:$0xff] }
  0xb7   :  { %vm171_vm5 = vmor %vm169_vm4, %vm170_vm3  ;;  %522 = vmatpush.msrb.mxu3 %v352_v17  ;;  %v375_v17 = vperm.slane %v370_v16, 1 }
  0xb8   :  { %v166_v20 = vsub.f32 1.0, %v165_v19  ;;  %v354_v19 = vld [vmem:[#allocation10 + $0x1e8] sm:$0xff] }
  0xb9   :  { %523 = vmatpush.msrb.mxu3 %v341_v21 }
  0xba   :  { %v167_v22 = vmul.f32 %v732_v18, %v166_v20  ;;  %v296_v20 = vld [vmem:[#allocation10 + $0x18] sm:$0xff] }
  0xbb   :  { %507 = vmatpush.msrb.mxu2 %v296_v20 }
  0xbc   :  { %v168_v24 = vadd.f32 %v732_v18, %v167_v22  ;;  %v342_v22 = vld [vmem:[#allocation10 + $0x188] sm:$0xff] }
  0xbe   :  { %v172_v26 = vsel %vm171_vm5, %v732_v18, %v168_v24  ;;  %v353_v18 = vld [vmem:[#allocation10 + $0x1e0] sm:$0xff]  ;;  %v366_v24 = vld [vmem:[#allocation10 + $0x248] sm:$0x1f] }
  0xbf   :  { %v177_v27 = vsel %vm174_vm7, %v176_v25, %v172_v26  ;;  %542 = vmatpush.msra.mxu0 %v353_v18  ;;  %v330_v25 = vld [vmem:[#allocation10 + $0x128] sm:$0xff]  ;;  %v331_v26 = vld [vmem:[#allocation10 + $0x130] sm:$0xff]  ;;  %v376_v18 = vperm.slane %v370_v16, 2 }
  0xc0   :  { %688 = vmatmul.msk.f32.vlgmr.msra.gmra.mxu1 %vm190_vm6, %v177_v27  ;;  %v332_v27 = vld [vmem:[#allocation10 + $0x138] sm:$0xff]  ;;  %524 = vmatpush.msrb.mxu3 %v330_v25  ;;  %v379_v25 = vperm.slane %v370_v16, 5 }
  0xc1   :  { %705 = vmatpush.msk.msra.mxu1 %vm194_vm2, %v365_v15  ;;  %543 = vmatpush.msra.mxu0 %v342_v22  ;;  %v303_v15 = vld [vmem:[#allocation10 + $0x50] sm:$0xff] }
  0xc2   :  { %525 = vmatpush.msrb.mxu3 %v319_v29 }
  0xc3   :  { %562 = vmatpush.msra.mxu1 %v354_v19  ;;  %544 = vmatpush.msra.mxu0 %v331_v26 }
  0xc4   :  { %526 = vmatpush.msrb.mxu3 %v308_v34 }
  0xc5   :  { %563 = vmatpush.msra.mxu1 %v343_v23  ;;  %545 = vmatpush.msra.mxu0 %v320_v30  ;;  %v374_v23 = vperm.slane %v370_v16, 0 }
  0xc7   :  { %564 = vmatpush.msra.mxu1 %v332_v27  ;;  %v380_v27 = vperm.slane %v370_v16, 6 }
  0xc9   :  { %565 = vmatpush.msra.mxu1 %v321_v31 }
 0x13d   :  { %v215_v36 = vpop.f32.mrf.mxu1 }
 0x13e   :  { %v216_v37 = vadd.f32 %v727_v35, %v215_v36  ;;  %v309_v35 = vld [vmem:[#allocation10 + $0x80] sm:$0xff]  ;;  %v310_v36 = vld [vmem:[#allocation10 + $0x88] sm:$0xff] }
 0x13f   :  { %546 = vmatpush.msra.mxu0 %v309_v35  ;;  %566 = vmatpush.msra.mxu1 %v310_v36  ;;  %v378_v35 = vperm.slane %v370_v16, 4  ;;  %v381_v36 = vperm.slane %v370_v16, 7 }
 0x140   :  { %v689_v38 = vmul.f32 -1.442695, %v216_v37 }
 0x142   :  { %733 = vpow2.f32 %v689_v38  ;;  %v333_v38 = vld [vmem:[#allocation10 + $0x140] sm:$0xff] }
 0x148   :  { %v734_v39 = vpop.eup %733 }
 0x149   :  { %v221_v40 = vadd.f32 1.0, %v734_v39  ;;  %v297_v39 = vld [vmem:[#allocation10 + $0x20] sm:$0xff] }
 0x14a   :  { %527 = vmatpush.msrb.mxu3 %v297_v39 }
 0x14b   :  { %735 = vrcp.f32 %v221_v40  ;;  %v233_v44 = vand.u32 2147483648, %v221_v40  ;;  %v231_v46 = vand.u32 2147483647, %v221_v40  ;;  %vm227_vm9 = vweird.f32 %v221_v40 }
 0x14d   :  { %v234_v48 = vor.u32 1.1754944e-38, %v233_v44  ;;  %vm232_vm11 = vcmp.eq.f32.partialorder %v231_v46, 8.507059e+37  ;;  %v311_v44 = vld [vmem:[#allocation10 + $0x90] sm:$0xff]  ;;  %v300_v46 = vld [vmem:[#allocation10 + $0x38] sm:$0xff] }
 0x151   :  { %v736_v41 = vpop.eup %735 }
 0x152   :  { %v223_v42 = vmul.f32 %v736_v41, %v221_v40  ;;  %vm228_vm8 = vweird.f32 %v736_v41  ;;  %v298_v40 = vld [vmem:[#allocation10 + $0x28] sm:$0xff] }
 0x153   :  { %vm229_vm10 = vmor %vm227_vm9, %vm228_vm8  ;;  %547 = vmatpush.msra.mxu0 %v298_v40 }
 0x154   :  { %v224_v43 = vsub.f32 1.0, %v223_v42  ;;  %v299_v42 = vld [vmem:[#allocation10 + $0x30] sm:$0xff] }
 0x155   :  { %567 = vmatpush.msra.mxu1 %v299_v42 }
 0x156   :  { %v225_v45 = vmul.f32 %v736_v41, %v224_v43  ;;  %v322_v43 = vld [vmem:[#allocation10 + $0xe8] sm:$0xff] }
 0x158   :  { %v226_v47 = vadd.f32 %v736_v41, %v225_v45 }
 0x15a   :  { %v230_v49 = vsel %vm229_vm10, %v736_v41, %v226_v47 }
 0x15b   :  { %v235_v50 = vsel %vm232_vm11, %v234_v48, %v230_v49 }
 0x15c   :  { %691 = vmatmul.msk.f32.vlgmr.msra.gmra.mxu2 %vm190_vm6, %v235_v50 }
 0x15d   :  { %707 = vmatpush.msk.msra.mxu2 %vm194_vm2, %v366_v24  ;;  %v377_v24 = vperm.slane %v370_v16, 3 }
 0x15f   :  { %582 = vmatpush.msra.mxu2 %v355_v28 }
 0x161   :  { %583 = vmatpush.msra.mxu2 %v344_v33 }
 0x163   :  { %584 = vmatpush.msra.mxu2 %v333_v38 }
 0x165   :  { %585 = vmatpush.msra.mxu2 %v322_v43 }
 0x167   :  { %586 = vmatpush.msra.mxu2 %v311_v44 }
 0x169   :  { %587 = vmatpush.msra.mxu2 %v300_v46 }
 0x1df   :  { %v271_v37 = vpop.f32.mrf.mxu2 }
 0x1e0   :  { %v272_v41 = vadd.f32 %v728_v32, %v271_v37  ;;  %v371_v37 = vld [vmem:[#allocation11 + $0x8] sm:$0x7] }
 0x1e1   :  { %v384_v42 = vperm.slane %v371_v37, 2 }
 0x1e2   :  { %v692_v45 = vmul.f32 -1.442695, %v272_v41  ;;  %v383_v41 = vperm.slane %v371_v37, 1 }
 0x1e4   :  { %737 = vpow2.f32 %v692_v45 }
 0x1ea   :  { %v738_v47 = vpop.eup %737 }
 0x1eb   :  { %v277_v48 = vadd.f32 1.0, %v738_v47 }
 0x1ed   :  { %739 = vrcp.f32 %v277_v48  ;;  %v289_v52 = vand.u32 2147483648, %v277_v48  ;;  %v287_v54 = vand.u32 2147483647, %v277_v48  ;;  %vm283_vm13 = vweird.f32 %v277_v48 }
 0x1ef   :  { %v290_v56 = vor.u32 1.1754944e-38, %v289_v52  ;;  %vm288_vm15 = vcmp.eq.f32.partialorder %v287_v54, 8.507059e+37 }
 0x1f3   :  { %v740_v49 = vpop.eup %739 }
 0x1f4   :  { %v279_v50 = vmul.f32 %v740_v49, %v277_v48  ;;  %vm284_vm12 = vweird.f32 %v740_v49  ;;  %v382_v48 = vperm.slane %v371_v37, 0 }
 0x1f5   :  { %vm285_vm14 = vmor %vm283_vm13, %vm284_vm12 }
 0x1f6   :  { %v280_v51 = vsub.f32 1.0, %v279_v50 }
 0x1f8   :  { %v281_v53 = vmul.f32 %v740_v49, %v280_v51 }
 0x1fa   :  { %v282_v55 = vadd.f32 %v740_v49, %v281_v53 }
 0x1fc   :  { %v286_v57 = vsel %vm285_vm14, %v740_v49, %v282_v55 }
 0x1fd   :  { %v291_v58 = vsel %vm288_vm15, %v290_v56, %v286_v57 }
 0x1fe   :  { %694 = vmatmul.msk.f32.vlgmr.msra.gmra.mxu3 %vm190_vm6, %v291_v58  ;;  %696 = vmatmul.msk.f32.vlgmr.msrb.gmra.mxu0 %vm190_vm6, %v291_v58 }
 0x1ff   :  { %698 = vmatmul.msk.f32.vlgmr.msrb.gmra.mxu1 %vm190_vm6, %v291_v58  ;;  %700 = vmatmul.msk.f32.vlgmr.msrb.gmra.mxu2 %vm190_vm6, %v291_v58 }
 0x200   :  { %709 = vmatpush.msk.msra.mxu3 %vm194_vm2, %v367_v59  ;;  %711 = vmatpush.msk.msrb.mxu0 %vm194_vm2, %v368_v60 }
 0x201   :  { %713 = vmatpush.msk.msrb.mxu1 %vm194_vm2, %v369_v61 }
 0x202   :  { %602 = vmatpush.msra.mxu3 %v356_v62  ;;  %622 = vmatpush.msrb.mxu0 %v357_v63 }
 0x203   :  { %642 = vmatpush.msrb.mxu1 %v358_v0 }
 0x204   :  { %603 = vmatpush.msra.mxu3 %v345_v1  ;;  %623 = vmatpush.msrb.mxu0 %v346_v2 }
 0x205   :  { %643 = vmatpush.msrb.mxu1 %v347_v3 }
 0x206   :  { %702 = vmatmul.msk.f32.vlgmr.msrb.gmra.mxu3 %vm190_vm6, %v291_v58  ;;  %704 = vmatmul.msk.f32.vlgmr.msra.gmra.mxu0 %vm190_vm6, %v291_v58 }
 0x207   :  { %706 = vmatmul.msk.f32.vlgmr.msra.gmra.mxu1 %vm190_vm6, %v291_v58  ;;  %708 = vmatmul.msk.f32.vlgmr.msra.gmra.mxu2 %vm190_vm6, %v291_v58 }
 0x208   :  { %604 = vmatpush.msra.mxu3 %v334_v4  ;;  %624 = vmatpush.msrb.mxu0 %v335_v5 }
 0x209   :  { %644 = vmatpush.msrb.mxu1 %v336_v6 }
 0x20a   :  { %605 = vmatpush.msra.mxu3 %v323_v7  ;;  %625 = vmatpush.msrb.mxu0 %v324_v8 }
 0x20b   :  { %645 = vmatpush.msrb.mxu1 %v325_v9 }
 0x20c   :  { %606 = vmatpush.msra.mxu3 %v312_v10  ;;  %626 = vmatpush.msrb.mxu0 %v313_v11 }
 0x20d   :  { %646 = vmatpush.msrb.mxu1 %v314_v12 }
 0x20e   :  { %607 = vmatpush.msra.mxu3 %v301_v13  ;;  %627 = vmatpush.msrb.mxu0 %v302_v14 }
 0x20f   :  { %647 = vmatpush.msrb.mxu1 %v303_v15  ;;  %710 = vmatmul.msk.f32.vlgmr.msra.gmra.mxu3 %vm190_vm6, %v291_v58 }
 0x210   :  { %712 = vmatmul.msk.f32.vlgmr.msrb.gmra.mxu0 %vm190_vm6, %v291_v58  ;;  %714 = vmatmul.msk.f32.vlgmr.msrb.gmra.mxu1 %vm190_vm6, %v291_v58 }
 0x27b   :  { %v469_v19 = vpop.f32.mrf.mxu0 }
 0x27c   :  { %v470_v20 = vadd.f32 %v469_v19, %v375_v17  ;;  %v489_v21 = vpop.f32.mrf.mxu1 }
 0x27d   :  { %v490_v22 = vadd.f32 %v489_v21, %v376_v18 }
 0x27e   :  { %653 = vst [vmem:[#allocation13 + $0x8] sm:$0xff] %v470_v20 }
 0x27f   :  { %654 = vst [vmem:[#allocation13 + $0x10] sm:$0xff] %v490_v22 }
 0x281   :  { %v449_v26 = vpop.f32.mrf.mxu3 }
 0x282   :  { %v450_v28 = vadd.f32 %v449_v26, %v374_v23  ;;  %v509_v29 = vpop.f32.mrf.mxu2 }
 0x283   :  { %v510_v30 = vadd.f32 %v509_v29, %v377_v24  ;;  %v549_v31 = vpop.f32.mrf.mxu0 }
 0x284   :  { %652 = vst [vmem:[#allocation13] sm:$0xff] %v450_v28  ;;  %v550_v32 = vadd.f32 %v549_v31, %v379_v25  ;;  %v569_v33 = vpop.f32.mrf.mxu1 }
 0x285   :  { %655 = vst [vmem:[#allocation13 + $0x18] sm:$0xff] %v510_v30  ;;  %v570_v34 = vadd.f32 %v569_v33, %v380_v27 }
 0x286   :  { %657 = vst [vmem:[#allocation13 + $0x28] sm:$0xff] %v550_v32 }
 0x287   :  { %658 = vst [vmem:[#allocation13 + $0x30] sm:$0xff] %v570_v34 }
 0x289   :  { %v529_v38 = vpop.f32.mrf.mxu3 }
 0x28a   :  { %v530_v39 = vadd.f32 %v529_v38, %v378_v35  ;;  %v589_v40 = vpop.f32.mrf.mxu2 }
 0x28b   :  { %v590_v43 = vadd.f32 %v589_v40, %v381_v36 }
 0x28c   :  { %656 = vst [vmem:[#allocation13 + $0x20] sm:$0xff] %v530_v39 }
 0x28d   :  { %659 = vst [vmem:[#allocation13 + $0x38] sm:$0xff] %v590_v43  ;;  %v629_v44 = vpop.f32.mrf.mxu0  ;;  %v649_v45 = vpop.f32.mrf.mxu1 }
 0x28e   :  { %v630_v46 = vadd.f32 %v629_v44, %v383_v41  ;;  %v650_v47 = vadd.f32 %v649_v45, %v384_v42 }
 0x290   :  { %661 = vst [vmem:[#allocation13 + $0x48] sm:$0xff] %v630_v46 }
 0x291   :  { %663 = vst.msk [vmem:[#allocation13 + $0x50] sm:$0xff] %vm662_vm0, %v650_v47 }
 0x292   :  { %v609_v49 = vpop.f32.mrf.mxu3 }
 0x293   :  { %v610_v50 = vadd.f32 %v609_v49, %v382_v48 }
 0x295   :  { %660 = vst [vmem:[#allocation13 + $0x40] sm:$0xff] %v610_v50 }
 0x296   :  { %674 = dma.vmem_to_hbm [thread:$0]  %s670_s20, 1408, %s672_s23, [#allocation4]  }
 0x297   :  { %917 = dma.done.wait [#allocation4], 1408  }
 0x298   :  { %918 = vsyncadd [#allocation4], 4294965888 }
 0x299   :  { %679 = vsyncpa [#allocation3], 1 }
 0x29a   :  { %680 = vsyncpa [#allocation6], 1 }
 0x29b   :  { %681 = vsyncpa [#allocation9], 1 }
 0x29c   :  { %682 = vsyncpa [#allocation12], 1 }
 0x29d   :  { %683 = vsyncpa [#allocation4], 1 }

</bundles_post_ra>
